<compile_context>
chip_gen: v6e
topology: v6e:2x2x1
jax: 0.10.0
libtpu: 0.0.40
codegen_flags: <defaults>
</compile_context>

<pallas_src>
from typing import NamedTuple

import jax
import jax.numpy as jnp
from jax import lax
from jax.experimental import pallas as pl
from jax.experimental.pallas import tpu as pltpu


def _round_up(x, m):
    return (x + m - 1) // m * m


class PreparedWeight(NamedTuple):
    wt: jax.Array   # (KP, OP) pre-transposed, cast, padded weight (v^T)
    outdim: int
    indim: int
    tn: int         # outdim tile size (multiple of 128)


def _dist_linear_kernel(x_ref, wt_ref, sg_ref, o_ref, cs_ref):
    """One (TM, TN) tile of scores = scale * x_n @ (g * v / ||v||)^T.

    Grid = (outdim tiles [outer, parallel], batch tiles [inner, arbitrary]).
    wt_ref : (KP, TN) slice of v^T — constant over the inner axis, so it is
             DMA'd from HBM exactly once per outdim tile.
    sg_ref : (1, TN) per-class scale_factor * g (lane-major).
    cs_ref : (1, TN) VMEM scratch caching scale_factor * g / ||v||.
    """
    i = pl.program_id(1)  # inner (batch-tile) index

    # Per-class column scale from the already-resident weight tile. Column-wise
    # sum of squares of v^T is lane-major (1, TN) directly (no transpose); rsqrt
    # goes to the EUP. The weight tile is constant across the inner axis, so
    # compute once per outdim tile and cache in VMEM scratch (guard is on the
    # sequential axis, safe under megacore sharding of the outer axis).
    @pl.when(i == 0)
    def _():
        w32 = wt_ref[...].astype(jnp.float32)
        ssq = jnp.sum(w32 * w32, axis=0, keepdims=True)          # (1, TN)
        # No eps on ||v|| (matches PyTorch WeightNorm). Padded outdim columns get
        # 0 * inf = NaN here; they are sliced off in the wrapper and cannot
        # contaminate real columns (purely per-lane math).
        cs_ref[...] = sg_ref[...] * lax.rsqrt(ssq)

    # x L2-normalization: cheap O(TM*K) VPU work, recomputed per tile so no
    # cross-grid state rides on the parallel axis. +1e-5 matches PyTorch.
    x = x_ref[...].astype(jnp.float32)
    inv_norm = 1.0 / (jnp.sqrt(jnp.sum(x * x, axis=1, keepdims=True)) + 1e-5)
    xn = (x * inv_norm).astype(wt_ref.dtype)

    # MXU-native (TM,K) @ (K,TN) contraction, f32 accumulation.
    cos = jnp.dot(xn, wt_ref[...], preferred_element_type=jnp.float32)
    o_ref[...] = (cos * cs_ref[...]).astype(o_ref.dtype)


def prepare_dist_linear_weight(weight_v, *, weight_dtype=jnp.bfloat16,
                               block_n=512):
    """One-time weight preparation — hoist / cache this outside the hot path.

    Transposes weight_v (outdim, indim) -> (indim, outdim), casts it to the MXU
    streaming dtype (bf16 by default: halves HBM traffic on the dominant operand;
    pass jnp.float32 for bit-faithful scores) and zero-pads to lane/sublane-dense
    tiles.
    """
    outdim, indim = weight_v.shape
    kp = _round_up(indim, 128)
    wbytes = jnp.dtype(weight_dtype).itemsize

    # outdim tile: default 512 (amortizes per-grid-step overhead on v6e/v7x),
    # shrunk so the double-buffered weight block stays within a v5e-safe budget.
    tn = min(_round_up(block_n, 128), _round_up(outdim, 128))
    while tn > 128 and 2 * kp * tn * wbytes > 6 * 1024 * 1024:
        tn = max(128, (tn // 2) // 128 * 128)
    op = _round_up(outdim, tn)

    wt = weight_v.T.astype(weight_dtype)
    if (kp, op) != (indim, outdim):
        wt = jnp.pad(wt, ((0, kp - indim), (0, op - outdim)))
    return PreparedWeight(wt=wt, outdim=outdim, indim=indim, tn=tn)


def dist_linear_prepared(x, prep, weight_g, *, block_m=128):
    """distLinear forward with a pre-prepared weight.

    x: (B, indim); weight_g: (outdim, 1) or (outdim,). Returns (B, outdim) in x.dtype.
    """
    B, indim = x.shape
    assert indim == prep.indim, (indim, prep.indim)
    outdim, tn = prep.outdim, prep.tn
    kp, op = prep.wt.shape
    scale = 2.0 if outdim <= 200 else 10.0

    # Only scale_factor * g goes to the kernel (lane-major, O(outdim) bytes);
    # ||v|| is computed in-kernel from the resident weight tile — no wrapper-side
    # full-weight HBM pass per call.
    sg = (scale * weight_g.reshape(-1).astype(jnp.float32))[None, :]
    if op != outdim:
        sg = jnp.pad(sg, ((0, 0), (0, op - outdim)))

    # Batch tile: multiple of 8, shrunk so x/out double-buffers fit the budget.
    xb = x.dtype.itemsize
    ob = x.dtype.itemsize
    tm = min(_round_up(block_m, 8), _round_up(B, 8))
    while tm > 8 and 2 * tm * (kp * xb + tn * ob) > 6 * 1024 * 1024:
        tm = max(8, (tm // 2) // 8 * 8)
    bp = _round_up(B, tm)
    x_p = x if (bp, kp) == (B, indim) else jnp.pad(x, ((0, bp - B), (0, kp - indim)))

    grid = (op // tn, bp // tm)   # (outdim tiles [outer], batch tiles [inner])

    cost = pl.CostEstimate(
        flops=2 * B * outdim * indim,
        transcendentals=B + outdim,
        bytes_accessed=(x.size * xb + prep.wt.size * prep.wt.dtype.itemsize
                        + B * outdim * ob + outdim * 4),
    )

    out_p = pl.pallas_call(
        _dist_linear_kernel,
        out_shape=jax.ShapeDtypeStruct((bp, op), x.dtype),
        grid_spec=pltpu.PrefetchScalarGridSpec(
            num_scalar_prefetch=0,
            grid=grid,
            in_specs=[
                pl.BlockSpec((tm, kp), lambda j, i: (i, 0)),   # x tile (inner stream)
                pl.BlockSpec((kp, tn), lambda j, i: (0, j)),   # v^T tile: constant over i
                pl.BlockSpec((1, tn), lambda j, i: (0, j)),    # scale*g (lane-major)
            ],
            out_specs=pl.BlockSpec((tm, tn), lambda j, i: (i, j)),
            scratch_shapes=[pltpu.VMEM((1, tn), jnp.float32)],  # cached column scale
        ),
        compiler_params=pltpu.CompilerParams(
            # Outdim outer & parallel: each TC reads a disjoint weight shard (the
            # weight is streamed from HBM once total); batch inner & sequential
            # (keeps the col-scale scratch cache valid on every core).
            dimension_semantics=("parallel", "arbitrary"),
            vmem_limit_bytes=32 * 1024 * 1024,   # explicit (v5e scoped default is 16 MiB)
        ),
        cost_estimate=cost,
    )(x_p, prep.wt, sg)

    if (bp, op) == (B, outdim):
        return out_p
    return out_p[:B, :outdim]


def dist_linear(x, weight_v, weight_g, *, weight_dtype=jnp.bfloat16,
                block_m=128, block_n=512):
    """Convenience wrapper: prepares the weight then applies. For repeated calls
    with the same weights, call prepare_dist_linear_weight once and reuse."""
    prep = prepare_dist_linear_weight(weight_v, weight_dtype=weight_dtype,
                                      block_n=block_n)
    return dist_linear_prepared(x, prep, weight_g, block_m=block_m)


def dist_linear_ref(x, weight_v, weight_g):
    scale = 2.0 if weight_v.shape[0] <= 200 else 10.0
    xn = x / (jnp.linalg.norm(x, axis=1, keepdims=True) + 1e-5)
    w = weight_g.reshape(-1, 1) * weight_v / jnp.linalg.norm(
        weight_v, axis=1, keepdims=True)
    return scale * xn @ w.T


if __name__ == "__main__":
    key = jax.random.PRNGKey(0)

    # (B, indim, outdim, block_m, block_n): the last config forces a multi-tile
    # grid (3 outdim tiles x 3 batch tiles) to exercise weight residency across
    # the inner axis, padding, and the per-outdim-tile scale cache.
    configs = [
        (8, 128, 16, 128, 512),
        (4, 96, 33, 128, 512),
        (24, 160, 300, 8, 128),
    ]

    for (B, indim, outdim, bm, bn) in configs:
        key, k_x, k_v = jax.random.split(key, 3)
        x = jax.random.normal(k_x, (B, indim), dtype=jnp.float32)
        bound = 1.0 / jnp.sqrt(jnp.float32(indim))      # nn.Linear default init
        weight_v = jax.random.uniform(k_v, (outdim, indim), minval=-bound,
                                      maxval=bound, dtype=jnp.float32)
        weight_g = jnp.linalg.norm(weight_v, axis=1, keepdims=True)  # WeightNorm init

        ref = dist_linear_ref(x, weight_v, weight_g)

        # Fast path: bf16 weight stream (documented default), f32 accumulation.
        prep = prepare_dist_linear_weight(weight_v, weight_dtype=jnp.bfloat16,
                                          block_n=bn)
        out_bf16 = jax.block_until_ready(
            dist_linear_prepared(x, prep, weight_g, block_m=bm))
        assert out_bf16.shape == (B, outdim)
        assert jnp.allclose(out_bf16, ref, atol=5e-2, rtol=5e-2), \
            f"bf16 path mismatch for shape {(B, indim, outdim)}"

        # Bit-faithful path: f32 weight stream.
        out_f32 = jax.block_until_ready(
            dist_linear(x, weight_v, weight_g, weight_dtype=jnp.float32,
                        block_m=bm, block_n=bn))
        assert out_f32.shape == (B, outdim)
        assert jnp.allclose(out_f32, ref, atol=1e-3, rtol=1e-3), \
            f"f32 path mismatch for shape {(B, indim, outdim)}"

    print("KERNEL_OK")
</pallas_src>

<mosaic_0001>
module attributes {stable_mosaic.version = 11 : i64} {
  func.func @_dist_linear_kernel(%arg0: i32, %arg1: i32, %arg2: memref<8x128xf32, #tpu.memory_space<vmem>>, %arg3: memref<128x128xbf16, #tpu.memory_space<vmem>>, %arg4: memref<1x128xf32, #tpu.memory_space<vmem>>, %arg5: memref<8x128xf32, #tpu.memory_space<vmem>>, %arg6: memref<1x128xf32, #tpu.memory_space<vmem>>) attributes {dimension_semantics = [#tpu.dimension_semantics<parallel>, #tpu.dimension_semantics<arbitrary>], iteration_bounds = array<i64: 1, 1>, scalar_prefetch = 0 : i64, scratch_operands = 1 : i64, tpu.core_type = #tpu.core_type<tc>, window_params = [{transform_indices = @transform_0, window_bounds = array<i64: 8, 128>}, {transform_indices = @transform_1, window_bounds = array<i64: 128, 128>}, {transform_indices = @transform_2, window_bounds = array<i64: 1, 128>}, {transform_indices = @transform_3, window_bounds = array<i64: 8, 128>}]} {
    %c0_i32 = arith.constant 0 : i32
    %0 = arith.cmpi eq, %arg1, %c0_i32 : i32
    %1 = arith.extui %0 : i1 to i32
    %c0_i32_0 = arith.constant 0 : i32
    %2 = arith.cmpi ne, %1, %c0_i32_0 : i32
    scf.if %2 {
      %c0_11 = arith.constant 0 : index
      %c0_12 = arith.constant 0 : index
      %21 = vector.load %arg3[%c0_11, %c0_12] : memref<128x128xbf16, #tpu.memory_space<vmem>>, vector<128x128xbf16>
      %22 = arith.extf %21 : vector<128x128xbf16> to vector<128x128xf32>
      %23 = arith.mulf %22, %22 : vector<128x128xf32>
      %cst_13 = arith.constant dense<0.000000e+00> : vector<128xf32>
      %24 = vector.multi_reduction <add>, %23, %cst_13 [0] : vector<128x128xf32> to vector<128xf32>
      %25 = vector.shape_cast %24 : vector<128xf32> to vector<1x128xf32>
      %c0_14 = arith.constant 0 : index
      %c0_15 = arith.constant 0 : index
      %26 = vector.load %arg4[%c0_14, %c0_15] : memref<1x128xf32, #tpu.memory_space<vmem>>, vector<1x128xf32>
      %27 = math.rsqrt %25 : vector<1x128xf32>
      %28 = arith.mulf %26, %27 : vector<1x128xf32>
      %c0_16 = arith.constant 0 : index
      %c0_17 = arith.constant 0 : index
      %29 = vector.load %arg6[%c0_16, %c0_17] : memref<1x128xf32, #tpu.memory_space<vmem>>, vector<1x128xf32>
      tpu.vector_store %arg6[%c0_16, %c0_17], %28 {strides = array<i32>} : memref<1x128xf32, #tpu.memory_space<vmem>>, vector<1x128xf32>,
    } else {
    }
    %c0 = arith.constant 0 : index
    %c0_1 = arith.constant 0 : index
    %3 = vector.load %arg2[%c0, %c0_1] : memref<8x128xf32, #tpu.memory_space<vmem>>, vector<8x128xf32>
    %4 = arith.mulf %3, %3 : vector<8x128xf32>
    %cst = arith.constant dense<0.000000e+00> : vector<8xf32>
    %5 = vector.multi_reduction <add>, %4, %cst [1] : vector<8x128xf32> to vector<8xf32>
    %6 = vector.shape_cast %5 : vector<8xf32> to vector<8x1xf32>
    %7 = math.sqrt %6 : vector<8x1xf32>
    %cst_2 = arith.constant 9.99999974E-6 : f32
    %8 = vector.broadcast %cst_2 : f32 to vector<8x1xf32>
    %9 = arith.addf %7, %8 : vector<8x1xf32>
    %cst_3 = arith.constant 1.000000e+00 : f32
    %10 = vector.broadcast %cst_3 : f32 to vector<8x1xf32>
    %11 = arith.divf %10, %9 : vector<8x1xf32>
    %12 = vector.broadcast %11 : vector<8x1xf32> to vector<8x128xf32>
    %13 = arith.mulf %3, %12 : vector<8x128xf32>
    %14 = arith.truncf %13 : vector<8x128xf32> to vector<8x128xbf16>
    %c0_4 = arith.constant 0 : index
    %c0_5 = arith.constant 0 : index
    %15 = vector.load %arg3[%c0_4, %c0_5] : memref<128x128xbf16, #tpu.memory_space<vmem>>, vector<128x128xbf16>
    %cst_6 = arith.constant dense<0.000000e+00> : vector<8x128xf32>
    %16 = tpu.matmul %14, %15, %cst_6 {dimension_numbers = #tpu.dot_dimension_numbers<[1], [0], [0], [1], [0, 0, 1, 1], [], []>} : vector<8x128xbf16>, vector<128x128xbf16>, vector<8x128xf32> -> vector<8x128xf32>
    %c0_7 = arith.constant 0 : index
    %c0_8 = arith.constant 0 : index
    %17 = vector.load %arg6[%c0_7, %c0_8] : memref<1x128xf32, #tpu.memory_space<vmem>>, vector<1x128xf32>
    %18 = vector.broadcast %17 : vector<1x128xf32> to vector<8x128xf32>
    %19 = arith.mulf %16, %18 : vector<8x128xf32>
    %c0_9 = arith.constant 0 : index
    %c0_10 = arith.constant 0 : index
    %20 = vector.load %arg5[%c0_9, %c0_10] : memref<8x128xf32, #tpu.memory_space<vmem>>, vector<8x128xf32>
    tpu.vector_store %arg5[%c0_9, %c0_10], %19 {strides = array<i32>} : memref<8x128xf32, #tpu.memory_space<vmem>>, vector<8x128xf32>,
    return
  }
  func.func @transform_0(%arg0: i32, %arg1: i32) -> (i32, i32) {
    %c0_i32 = arith.constant 0 : i32
    %c0_i32_0 = arith.constant 0 : i32
    return %arg1, %c0_i32 : i32, i32
  }
  func.func @transform_1(%arg0: i32, %arg1: i32) -> (i32, i32) {
    %c0_i32 = arith.constant 0 : i32
    %c0_i32_0 = arith.constant 0 : i32
    return %c0_i32, %arg0 : i32, i32
  }
  func.func @transform_2(%arg0: i32, %arg1: i32) -> (i32, i32) {
    %c0_i32 = arith.constant 0 : i32
    %c0_i32_0 = arith.constant 0 : i32
    return %c0_i32, %arg0 : i32, i32
  }
  func.func @transform_3(%arg0: i32, %arg1: i32) -> (i32, i32) {
    %c0_i32 = arith.constant 0 : i32
    return %arg1, %arg0 : i32, i32
  }
}

</mosaic_0001>

<bundles_post_ra>
// kernel: tpu_custom_call.1
= control target key start
LH: loop header
LB: loop body
LE: loop exit
PB: predicated region body
PF: predicated region fallthrough
CT: control target
= control target key end

     0   :  { %8 = vsyncpa [#allocation4], 0  ;;  %s472_s0 = inlined_call_operand.hbm [shape: f32[8,128], index: 0, kind: input, shape index: {}]   ;;  %s473_s1 = inlined_call_operand.hbm [shape: bf16[128,128], index: 1, kind: input, shape index: {}]   ;;  %s474_s2 = inlined_call_operand.vmem [shape: f32[1,128], index: 2, kind: input, shape index: {}]   ;;  %s475_s3 = inlined_call_operand.hbm [shape: f32[8,128], index: 3, kind: output, shape index: {}]  }
   0x1   :  { %9 = vsyncpa [#allocation7], 0 }
   0x2   :  { %10 = vsyncpa [#allocation5], 0  ;;  %s428_s12 = smov [#allocation3]   ;;  %s429_s14 = smov [#allocation6]  }
   0x3   :  { %s17_s13 = sshll.u32 %s428_s12, 4  ;;  %s26_s15 = sshll.u32 %s429_s14, 4  ;;  %s18_s13 = int_to_ptr.vmem [resolvable:$true] %s17_s13  ;;  %s27_s15 = int_to_ptr.vmem [resolvable:$true] %s26_s15 }
   0x4   :  { %s370_s16 = scalar_lea.vmem %s18_s13, 128  ;;  %p375_p1 = scmp.lt.s32.totalorder %s18_s13, %s18_s13 }
   0x5   :  { %p371_p0 = scmp.ne.s32.totalorder %s18_s13, %s370_s16  ;;  %p376_p2 = scmp.lt.s32.totalorder %s370_s16, %s370_s16 }
   0x7   :  { %p377_p3 = por %p376_p2, %p375_p1 }
   0x9   :  { %p378_p4 = pnand %p377_p3, %p371_p0 }
   0xb   :  { %381 = shalt.err (!%p378_p4)
}
   0xc   :  { %20 = dma.hbm_to_vmem [thread:$0]  %s472_s0, 128, %s18_s13, [#allocation4]  }
   0xd   :  { %s390_s19 = scalar_lea.vmem %s27_s15, 1024  ;;  %p395_p6 = scmp.lt.s32.totalorder %s27_s15, %s27_s15 }
   0xe   :  { %p391_p5 = scmp.ne.s32.totalorder %s27_s15, %s390_s19  ;;  %p396_p7 = scmp.lt.s32.totalorder %s390_s19, %s390_s19 }
  0x10   :  { %p397_p8 = por %p396_p7, %p395_p6 }
  0x12   :  { %p398_p9 = pnand %p397_p8, %p391_p5 }
  0x14   :  { %401 = shalt.err (!%p398_p9)
}
  0x15   :  { %s430_s20 = smov 64   ;;  %s431_s21 = smov 4  }
  0x16   :  { %32 = dma.hbm_to_vmem [thread:$0]  %s473_s1, 1024, %s27_s15, [#allocation7], %s430_s20, %s430_s20, %s431_s21  }
  0x17   :  { %422 = dma.done.wait [#allocation4], 128  }
  0x18   :  { %423 = vsyncadd [#allocation4], 4294967168 }
  0x19   :  { %424 = dma.done.wait [#allocation7], 1024  }
  0x1a   :  { %425 = vsyncadd [#allocation7], 4294966272  ;;  %v461_v0 = vld [vmem:[#allocation3] sm:$0xff]  ;;  %v432_v3 = vmov 0.0   ;;  %v349_v4 = vld [vmem:[#allocation6 + $0x30] sm:$0xff]   ;;  %vm433_vm0 = vmmov 0  }
  0x1b   :  { %v120_v1 = vmul.f32 %v461_v0, %v461_v0  ;;  %v348_v2 = vld [vmem:[#allocation6 + $0x38] sm:$0xff]   ;;  %321 = vmatprep.subr.bf16.mxu0 %v432_v3  ;;  %v350_v5 = vld [vmem:[#allocation6 + $0x28] sm:$0xff]   ;;  %v351_v6 = vld [vmem:[#allocation6 + $0x20] sm:$0xff]   ;;  %337 = vmatprep.mubr.msk.bf16.mxu0 %vm433_vm0, %v432_v3 }
  0x1c   :  { %322 = vmatpush3.bf16.msra.mxu0 %v348_v2  ;;  %v352_v7 = vld [vmem:[#allocation6 + $0x18] sm:$0xff]   ;;  %v353_v8 = vld [vmem:[#allocation6 + $0x10] sm:$0xff]   ;;  %v354_v9 = vld [vmem:[#allocation6 + $0x8] sm:$0xff]  }
  0x1d   :  { %121 = vadd.xlane.f32.xlu0 %v120_v1  ;;  %323 = vmatprep.subr.bf16.mxu0 %v432_v3  ;;  %v355_v10 = vld [vmem:[#allocation6] sm:$0xff]   ;;  %v305_v12 = vld [vmem:[#allocation6 + $0x8] sm:$0xff]   ;;  %v306_v16 = vld [vmem:[#allocation6 + $0x10] sm:$0xff]  }
  0x1e   :  { %v274_v11 = vld [vmem:[#allocation6] sm:$0xff]   ;;  %v279_v15 = vunpack.c.l.bf16 %v305_v12  ;;  %v280_v17 = vunpack.c.h.bf16 %v305_v12  ;;  %v283_v20 = vunpack.c.l.bf16 %v306_v16  ;;  %v307_v22 = vld [vmem:[#allocation6 + $0x18] sm:$0xff]   ;;  %v284_v23 = vunpack.c.h.bf16 %v306_v16  ;;  %v309_v36 = vld [vmem:[#allocation6 + $0x28] sm:$0xff]  }
  0x1f   :  { %v275_v13 = vunpack.c.l.bf16 %v274_v11  ;;  %v276_v14 = vunpack.c.h.bf16 %v274_v11  ;;  %v287_v26 = vunpack.c.l.bf16 %v307_v22  ;;  %v308_v29 = vld [vmem:[#allocation6 + $0x20] sm:$0xff]   ;;  %v288_v30 = vunpack.c.h.bf16 %v307_v22  ;;  %v310_v43 = vld [vmem:[#allocation6 + $0x30] sm:$0xff]   ;;  %v311_v50 = vld [vmem:[#allocation6 + $0x38] sm:$0xff]  }
  0x20   :  { %324 = vmatpush3.bf16.msra.mxu0 %v349_v4  ;;  %v80_v21 = vmul.f32 %v279_v15, %v279_v15  ;;  %v81_v24 = vmul.f32 %v280_v17, %v280_v17  ;;  %v82_v27 = vmul.f32 %v283_v20, %v283_v20  ;;  %v83_v31 = vmul.f32 %v284_v23, %v284_v23 }
  0x21   :  { %325 = vmatprep.subr.bf16.mxu0 %v432_v3  ;;  %v78_v18 = vmul.f32 %v275_v13, %v275_v13  ;;  %v79_v19 = vmul.f32 %v276_v14, %v276_v14  ;;  %v291_v33 = vunpack.c.l.bf16 %v308_v29  ;;  %v84_v34 = vmul.f32 %v287_v26, %v287_v26 }
  0x22   :  { %v292_v37 = vunpack.c.h.bf16 %v308_v29  ;;  %v85_v38 = vmul.f32 %v288_v30, %v288_v30  ;;  %v295_v40 = vunpack.c.l.bf16 %v309_v36  ;;  %v296_v44 = vunpack.c.h.bf16 %v309_v36 }
  0x23   :  { %v94_v25 = vadd.f32 %v79_v19, %v78_v18  ;;  %v86_v41 = vmul.f32 %v291_v33, %v291_v33  ;;  %v299_v47 = vunpack.c.l.bf16 %v310_v43  ;;  %v300_v51 = vunpack.c.h.bf16 %v310_v43 }
  0x24   :  { %326 = vmatpush3.bf16.msra.mxu0 %v350_v5  ;;  %v87_v45 = vmul.f32 %v292_v37, %v292_v37  ;;  %v88_v48 = vmul.f32 %v295_v40, %v295_v40  ;;  %v89_v52 = vmul.f32 %v296_v44, %v296_v44  ;;  %v303_v54 = vunpack.c.l.bf16 %v311_v50 }
  0x25   :  { %327 = vmatprep.subr.bf16.mxu0 %v432_v3  ;;  %v95_v28 = vadd.f32 %v94_v25, %v80_v21  ;;  %v90_v55 = vmul.f32 %v299_v47, %v299_v47  ;;  %v304_v57 = vunpack.c.h.bf16 %v311_v50  ;;  %v91_v58 = vmul.f32 %v300_v51, %v300_v51 }
  0x26   :  { %v92_v60 = vmul.f32 %v303_v54, %v303_v54 }
  0x27   :  { %v96_v32 = vadd.f32 %v95_v28, %v81_v24  ;;  %v93_v62 = vmul.f32 %v304_v57, %v304_v57 }
  0x28   :  { %328 = vmatpush3.bf16.msra.mxu0 %v351_v6 }
  0x29   :  { %329 = vmatprep.subr.bf16.mxu0 %v432_v3  ;;  %v97_v35 = vadd.f32 %v96_v32, %v82_v27 }
  0x2b   :  { %v98_v39 = vadd.f32 %v97_v35, %v83_v31 }
  0x2c   :  { %330 = vmatpush3.bf16.msra.mxu0 %v352_v7 }
  0x2d   :  { %331 = vmatprep.subr.bf16.mxu0 %v432_v3  ;;  %v99_v42 = vadd.f32 %v98_v39, %v84_v34 }
  0x2f   :  { %v100_v46 = vadd.f32 %v99_v42, %v85_v38 }
  0x30   :  { %332 = vmatpush3.bf16.msra.mxu0 %v353_v8 }
  0x31   :  { %333 = vmatprep.subr.bf16.mxu0 %v432_v3  ;;  %v101_v49 = vadd.f32 %v100_v46, %v86_v41 }
  0x33   :  { %v102_v53 = vadd.f32 %v101_v49, %v87_v45 }
  0x34   :  { %334 = vmatpush3.bf16.msra.mxu0 %v354_v9  ;;  %v115_v9 = vld [vmem:[%s474_s2] sm:$0x1]  ;;  %s434_s2 = smov [#allocation8]  }
  0x35   :  { %335 = vmatprep.subr.bf16.mxu0 %v432_v3  ;;  %v103_v56 = vadd.f32 %v102_v53, %v88_v48  ;;  %s254_s24 = sshll.u32 %s434_s2, 4  ;;  %s255_s24 = int_to_ptr.vmem [resolvable:$true] %s254_s24 }
  0x36   :  { %s402_s25 = scalar_lea.vmem %s255_s24, 128  ;;  %p407_p11 = scmp.lt.s32.totalorder %s255_s24, %s255_s24 }
  0x37   :  { %v104_v59 = vadd.f32 %v103_v56, %v89_v52  ;;  %p403_p10 = scmp.ne.s32.totalorder %s255_s24, %s402_s25  ;;  %p408_p12 = scmp.lt.s32.totalorder %s402_s25, %s402_s25 }
  0x38   :  { %336 = vmatpush3.bf16.msra.mxu0 %v355_v10 }
  0x39   :  { %v105_v61 = vadd.f32 %v104_v59, %v90_v55  ;;  %p409_p13 = por %p408_p12, %p407_p11 }
  0x3b   :  { %v106_v63 = vadd.f32 %v105_v61, %v91_v58  ;;  %p410_p0 = pnand %p409_p13, %p403_p10 }
  0x3d   :  { %v107_v1 = vadd.f32 %v106_v63, %v92_v60 }
  0x3f   :  { %v108_v2 = vadd.f32 %v107_v1, %v93_v62 }
  0x41   :  { %v109_v3 = vrot.slane %v108_v2, 4 }
  0x43   :  { %v110_v4 = vadd.f32 %v109_v3, %v108_v2 }
  0x45   :  { %v111_v5 = vrot.slane %v110_v4, 2 }
  0x47   :  { %v112_v6 = vadd.f32 %v111_v5, %v110_v4 }
  0x49   :  { %v113_v7 = vrot.slane %v112_v6, 1 }
  0x4b   :  { %v114_v8 = vadd.f32 %v113_v7, %v112_v6 }
  0x4d   :  { %356 = vrsqrt.f32 %v114_v8 }
  0x5a   :  { %v357_v10 = vpop.eup %356 }
  0x5b   :  { %v117_v11 = vmul.f32 %v357_v10, %v115_v9 }
  0x5d   :  { %118 = vst [vmem:[#allocation2] sm:$0x1] %v117_v11 }
  0x64   :  { %v272_v22 = vld [vmem:[#allocation2] ss:$0 sm:$0xff] }
  0xa6   :  { %v122_v12 = vpop.xlane.xlu0 %121 }
  0xa7   :  { %358 = vrsqrt.f32 %v122_v12  ;;  %vm125_vm1 = vcmp.eq.f32.partialorder %v122_v12, inf  ;;  %v128_v15 = vand.u32 2147483648, %v122_v12  ;;  %vm127_vm2 = vcmp.eq.f32.partialorder %v122_v12, 0.0 }
  0xb4   :  { %v359_v13 = vpop.eup %358 }
  0xb5   :  { %v124_v14 = vmul.f32 %v359_v13, %v122_v12 }
  0xb7   :  { %v126_v16 = vsel %vm125_vm1, %v122_v12, %v124_v14 }
  0xb8   :  { %v129_v17 = vsel %vm127_vm2, %v128_v15, %v126_v16 }
  0xb9   :  { %v130_v18 = vadd.f32 1e-05, %v129_v17 }
  0xbb   :  { %360 = vrcp.f32 %v130_v18 }
  0xc8   :  { %v361_v19 = vpop.eup %360 }
  0xc9   :  { %v133_v20 = vmul.f32 %v361_v19, %v461_v0 }
  0xcb   :  { %v134_v21 = vpack.c.bf16 %v133_v20, %v133_v20 }
  0xcd   :  { %338 = vmatmul.mubr.bf16.vlgmr.msra.gmra.mxu0 %v134_v21 }
 0x18d   :  { %v233_v23 = vpop.f32.mrf.mxu0 }
 0x18e   :  { %v246_v24 = vmul.f32 %v272_v22, %v233_v23 }
 0x18f   :  { %v339_v25 = vpop.f32.mrf.mxu0 }
 0x190   :  { %247 = vst [vmem:[#allocation8] sm:$0xff] %v246_v24 }
 0x191   :  { %v236_v26 = vpop.f32.mrf.mxu0 }
 0x192   :  { %413 = shalt.err (!%p410_p0)
}
 0x193   :  { %257 = dma.vmem_to_hbm [thread:$0]  %s255_s24, 128, %s475_s3, [#allocation5]   ;;  %v340_v0 = vpop.f32.mrf.mxu0 }
 0x194   :  { %426 = dma.done.wait [#allocation5], 128  }
 0x195   :  { %427 = vsyncadd [#allocation5], 4294967168 }
 0x196   :  { %261 = vsyncpa [#allocation4], 1 }
 0x197   :  { %262 = vsyncpa [#allocation7], 1 }
 0x198   :  { %263 = vsyncpa [#allocation5], 1 }

</bundles_post_ra>
